<compile_context>
chip_gen: v7x
topology: tpu7x:2x2x1
jax: 0.10.0
libtpu: 0.0.40
codegen_flags: <defaults>
</compile_context>

<pallas_src>
import functools

import jax
import jax.numpy as jnp
from jax import lax
from jax.experimental import pallas as pl
from jax.experimental.pallas import tpu as pltpu


def _sigmoid(x):
    # sigmoid(x) = 0.5 * tanh(0.5 * x) + 0.5  -> single EUP tanh + cheap VPU fma.
    return 0.5 * jnp.tanh(0.5 * x) + 0.5


def _lstm_encoder_kernel(
    x_ref,                     # (1, B, In)   per-timestep block
    h0_ref, c0_ref,            # (1, B, H)    initial hidden state (resident)
    w1_ref, b1_ref,            # (In, H), (1, H)
    wg_ref, bg_ref,            # (2H, 4H), (1, 4H)  fused LSTM gate weight/bias
    w2_ref, b2_ref,            # (H, H), (1, H)
    wemb_ref, bemb_ref,        # (H, out), (1, out)
    z_ref,                     # (1, B, out)  per-timestep block
    hn_ref, cn_ref,            # (1, B, H)    final hidden state (written once)
    h_sc, c_sc,                # (B, H) VMEM scratch, carried across grid steps
    *, hidden_dim: int, normalize_z: bool,
):
    t = pl.program_id(0)
    H = hidden_dim

    # Load the initial hidden state into the resident scratch on the first step.
    @pl.when(t == 0)
    def _():
        h_sc[...] = h0_ref[0]
        c_sc[...] = c0_ref[0]

    x = x_ref[0]                 # (B, In)
    h_prev = h_sc[...]           # (B, H)
    c_prev = c_sc[...]           # (B, H)

    # fc1 + ReLU
    h = jnp.dot(x, w1_ref[...], preferred_element_type=jnp.float32) + b1_ref[...]
    h = jnp.maximum(h, 0.0)

    # Single LSTM step, PyTorch gate order (i, f, g, o).
    # Two MXU dots on static sublane slices of the pre-stacked gate weight
    # (no lane-axis concat); bias is the pre-folded b_ih + b_hh.
    gates = (
        jnp.dot(h, wg_ref[0:H, :], preferred_element_type=jnp.float32)
        + jnp.dot(h_prev, wg_ref[H:2 * H, :], preferred_element_type=jnp.float32)
        + bg_ref[...]
    )

    if 4 * H <= 128:
        # gates fits in a single vreg: activate full width once, then slice.
        sig = _sigmoid(gates)
        tnh = jnp.tanh(gates)
        i_g = sig[:, 0 * H:1 * H]
        f_g = sig[:, 1 * H:2 * H]
        g_g = tnh[:, 2 * H:3 * H]
        o_g = sig[:, 3 * H:4 * H]
    else:
        # Larger H: only run the transcendental each gate group actually needs.
        if_act = _sigmoid(gates[:, 0:2 * H])
        i_g = if_act[:, 0:H]
        f_g = if_act[:, H:2 * H]
        g_g = jnp.tanh(gates[:, 2 * H:3 * H])
        o_g = _sigmoid(gates[:, 3 * H:4 * H])

    c_new = f_g * c_prev + i_g * g_g
    h_new = o_g * jnp.tanh(c_new)

    # Carry the hidden state to the next timestep in VMEM scratch.
    h_sc[...] = h_new
    c_sc[...] = c_new

    # fc2 + ReLU
    h2 = jnp.dot(h_new, w2_ref[...], preferred_element_type=jnp.float32) + b2_ref[...]
    h2 = jnp.maximum(h2, 0.0)

    # embed
    z = jnp.dot(h2, wemb_ref[...], preferred_element_type=jnp.float32) + bemb_ref[...]

    if normalize_z:
        # F.normalize(z, p=2, dim=1): z / max(||z||_2, eps), eps=1e-12.
        # Clamp sum-of-squares (eps^2) and use rsqrt (EUP slot).
        sumsq = jnp.sum(z * z, axis=1, keepdims=True)
        z = z * lax.rsqrt(jnp.maximum(sumsq, 1e-24))

    z_ref[0] = z

    # Write the final hidden state back only once, on the last timestep.
    @pl.when(t == pl.num_programs(0) - 1)
    def _():
        hn_ref[0] = h_new
        cn_ref[0] = c_new


def lstm_encoder_forward_seq(xs, hidden, params, *, normalize_z: bool):
    """Run T decode steps in one kernel launch.

    xs: (T, B, input_dim); hidden: tuple of (1, B, H) arrays (h0, c0).
    `params` must come from `fuse_params(...)`.
    Returns (z of shape (T, B, output_dim), (h_n, c_n) each (1, B, H)).
    """
    h0, c0 = hidden
    T, B, In = xs.shape
    H = params["w_gates"].shape[0] // 2
    out_dim = params["w_emb"].shape[1]

    kernel = functools.partial(
        _lstm_encoder_kernel, hidden_dim=H, normalize_z=normalize_z
    )

    operands = (
        xs, h0, c0,
        params["w1"], params["b1"],
        params["w_gates"], params["b_gates"],
        params["w2"], params["b2"],
        params["w_emb"], params["b_emb"],
    )

    vmem_full = pl.BlockSpec(memory_space=pltpu.MemorySpace.VMEM)

    in_specs = [
        pl.BlockSpec((1, B, In), lambda t: (t, 0, 0)),   # xs: one timestep per step
        vmem_full, vmem_full,                            # h0, c0 (resident)
        vmem_full, vmem_full,                            # w1, b1
        vmem_full, vmem_full,                            # w_gates, b_gates
        vmem_full, vmem_full,                            # w2, b2
        vmem_full, vmem_full,                            # w_emb, b_emb
    ]

    out_specs = (
        pl.BlockSpec((1, B, out_dim), lambda t: (t, 0, 0)),  # z per timestep
        pl.BlockSpec((1, B, H), lambda t: (0, 0, 0)),        # h_n (written last step)
        pl.BlockSpec((1, B, H), lambda t: (0, 0, 0)),        # c_n (written last step)
    )

    out_shape = (
        jax.ShapeDtypeStruct((T, B, out_dim), jnp.float32),
        jax.ShapeDtypeStruct((1, B, H), jnp.float32),
        jax.ShapeDtypeStruct((1, B, H), jnp.float32),
    )

    # Advisory cost hint for XLA scheduling around this small custom call.
    flops = 2 * T * B * (In * H + 8 * H * H + H * H + H * out_dim)
    transcendentals = T * B * (5 * H + 1)
    bytes_accessed = sum(
        int(a.size) * a.dtype.itemsize for a in operands
    ) + 4 * (T * B * out_dim + 2 * B * H)

    z, h_n, c_n = pl.pallas_call(
        kernel,
        grid=(T,),
        in_specs=in_specs,
        out_specs=out_specs,
        out_shape=out_shape,
        scratch_shapes=[
            pltpu.VMEM((B, H), jnp.float32),   # h carry
            pltpu.VMEM((B, H), jnp.float32),   # c carry
        ],
        # Reuse the h0 / c0 HBM buffers in place for h_n / c_n (decode hot path).
        input_output_aliases={1: 1, 2: 2},
        compiler_params=pltpu.CompilerParams(
            dimension_semantics=("arbitrary",),
        ),
        cost_estimate=pl.CostEstimate(
            flops=flops,
            transcendentals=transcendentals,
            bytes_accessed=bytes_accessed,
        ),
    )(*operands)

    return z, (h_n, c_n)


def lstm_encoder_forward(x, hidden, params, *, normalize_z: bool):
    """Single-step forward matching the PyTorch module: x is (B, input_dim)."""
    zs, hidden = lstm_encoder_forward_seq(
        x[None], hidden, params, normalize_z=normalize_z
    )
    return zs[0], hidden


def init_params(key, input_dim, hidden_dim, output_dim):
    """PyTorch-like uniform(-1/sqrt(fan_in), 1/sqrt(fan_in)) init.

    Weights are stored transposed: (in_features, out_features)."""
    def uniform(k, shape, fan_in):
        bound = 1.0 / jnp.sqrt(jnp.float32(fan_in))
        return jax.random.uniform(k, shape, jnp.float32, -bound, bound)

    ks = jax.random.split(key, 10)
    H = hidden_dim
    return {
        "w1": uniform(ks[0], (input_dim, H), input_dim),
        "b1": uniform(ks[1], (1, H), input_dim),
        "w_ih": uniform(ks[2], (H, 4 * H), H),
        "b_ih": uniform(ks[3], (1, 4 * H), H),
        "w_hh": uniform(ks[4], (H, 4 * H), H),
        "b_hh": uniform(ks[5], (1, 4 * H), H),
        "w2": uniform(ks[6], (H, H), H),
        "b2": uniform(ks[7], (1, H), H),
        "w_emb": uniform(ks[8], (H, output_dim), H),
        "b_emb": uniform(ks[9], (1, output_dim), H),
    }


def fuse_params(params):
    """One-time fusion: stack [w_ih; w_hh] -> (2H, 4H) and fold b_ih + b_hh."""
    fused = dict(params)
    fused["w_gates"] = jnp.concatenate([params["w_ih"], params["w_hh"]], axis=0)
    fused["b_gates"] = params["b_ih"] + params["b_hh"]
    return fused


def _reference_seq(xs, hidden, raw, normalize_z):
    """Pure-JAX reference (high-precision matmuls), step-by-step like PyTorch."""
    hp = lax.Precision.HIGHEST
    h, c = hidden[0][0], hidden[1][0]
    H = raw["w_ih"].shape[0]
    zs = []
    for t in range(xs.shape[0]):
        a = jnp.maximum(jnp.dot(xs[t], raw["w1"], precision=hp) + raw["b1"], 0.0)
        gates = (jnp.dot(a, raw["w_ih"], precision=hp) + raw["b_ih"]
                 + jnp.dot(h, raw["w_hh"], precision=hp) + raw["b_hh"])
        i = jax.nn.sigmoid(gates[:, 0:H])
        f = jax.nn.sigmoid(gates[:, H:2 * H])
        g = jnp.tanh(gates[:, 2 * H:3 * H])
        o = jax.nn.sigmoid(gates[:, 3 * H:4 * H])
        c = f * c + i * g
        h = o * jnp.tanh(c)
        h2 = jnp.maximum(jnp.dot(h, raw["w2"], precision=hp) + raw["b2"], 0.0)
        z = jnp.dot(h2, raw["w_emb"], precision=hp) + raw["b_emb"]
        if normalize_z:
            n = jnp.maximum(jnp.sqrt(jnp.sum(z * z, axis=1, keepdims=True)), 1e-12)
            z = z / n
        zs.append(z)
    return jnp.stack(zs), (h[None], c[None])


if __name__ == "__main__":
    input_dim, hidden_dim, output_dim = 16, 32, 16
    batch, seq_len = 8, 4
    normalize_z = True

    key = jax.random.PRNGKey(0)
    k_param, k_x = jax.random.split(key)
    raw_params = init_params(k_param, input_dim, hidden_dim, output_dim)
    params = fuse_params(raw_params)
    xs = jax.random.normal(k_x, (seq_len, batch, input_dim), jnp.float32)

    # init_hidden(bs): zeros of shape (1, batch, hidden_dim)
    hidden0 = (
        jnp.zeros((1, batch, hidden_dim), jnp.float32),
        jnp.zeros((1, batch, hidden_dim), jnp.float32),
    )

    # Fused multi-step decode path (T timesteps in one kernel launch).
    zs, (h_n, c_n) = lstm_encoder_forward_seq(
        xs, hidden0, params, normalize_z=normalize_z
    )
    jax.block_until_ready((zs, h_n, c_n))

    # Single-step path matching the PyTorch forward signature.
    z1, (h1, c1) = lstm_encoder_forward(
        xs[0], hidden0, params, normalize_z=normalize_z
    )
    jax.block_until_ready((z1, h1, c1))

    assert zs.shape == (seq_len, batch, output_dim)
    assert h_n.shape == (1, batch, hidden_dim)
    assert c_n.shape == (1, batch, hidden_dim)
    assert z1.shape == (batch, output_dim)

    # Numerical check against a pure-JAX reference of the PyTorch module.
    zs_ref, (h_ref, c_ref) = _reference_seq(xs, hidden0, raw_params, normalize_z)
    assert jnp.allclose(zs, zs_ref, atol=2e-2, rtol=2e-2)
    assert jnp.allclose(h_n, h_ref, atol=2e-2, rtol=2e-2)
    assert jnp.allclose(c_n, c_ref, atol=2e-2, rtol=2e-2)
    assert jnp.allclose(z1, zs_ref[0], atol=2e-2, rtol=2e-2)

    print("KERNEL_OK")
</pallas_src>

<mosaic_0001>
module attributes {stable_mosaic.version = 11 : i64} {
  func.func @_lstm_encoder_kernel(%arg0: i32, %arg1: memref<1x8x16xf32, #tpu.memory_space<vmem>>, %arg2: memref<1x8x32xf32, #tpu.memory_space<vmem>>, %arg3: memref<1x8x32xf32, #tpu.memory_space<vmem>>, %arg4: memref<16x32xf32, #tpu.memory_space<vmem>>, %arg5: memref<1x32xf32, #tpu.memory_space<vmem>>, %arg6: memref<64x128xf32, #tpu.memory_space<vmem>>, %arg7: memref<1x128xf32, #tpu.memory_space<vmem>>, %arg8: memref<32x32xf32, #tpu.memory_space<vmem>>, %arg9: memref<1x32xf32, #tpu.memory_space<vmem>>, %arg10: memref<32x16xf32, #tpu.memory_space<vmem>>, %arg11: memref<1x16xf32, #tpu.memory_space<vmem>>, %arg12: memref<1x8x16xf32, #tpu.memory_space<vmem>>, %arg13: memref<1x8x32xf32, #tpu.memory_space<vmem>>, %arg14: memref<1x8x32xf32, #tpu.memory_space<vmem>>, %arg15: memref<8x32xf32, #tpu.memory_space<vmem>>, %arg16: memref<8x32xf32, #tpu.memory_space<vmem>>) attributes {dimension_semantics = [#tpu.dimension_semantics<arbitrary>], iteration_bounds = array<i64: 4>, scalar_prefetch = 0 : i64, scratch_operands = 2 : i64, tpu.core_type = #tpu.core_type<tc>, window_params = [{transform_indices = @transform_0, window_bounds = array<i64: 1, 8, 16>}, {pipeline_mode = #tpu.pipeline_mode<synchronous>, transform_indices = @transform_1, window_bounds = array<i64: 1, 8, 32>}, {pipeline_mode = #tpu.pipeline_mode<synchronous>, transform_indices = @transform_2, window_bounds = array<i64: 1, 8, 32>}, {pipeline_mode = #tpu.pipeline_mode<synchronous>, transform_indices = @transform_3, window_bounds = array<i64: 16, 32>}, {pipeline_mode = #tpu.pipeline_mode<synchronous>, transform_indices = @transform_4, window_bounds = array<i64: 1, 32>}, {pipeline_mode = #tpu.pipeline_mode<synchronous>, transform_indices = @transform_5, window_bounds = array<i64: 64, 128>}, {pipeline_mode = #tpu.pipeline_mode<synchronous>, transform_indices = @transform_6, window_bounds = array<i64: 1, 128>}, {pipeline_mode = #tpu.pipeline_mode<synchronous>, transform_indices = @transform_7, window_bounds = array<i64: 32, 32>}, {pipeline_mode = #tpu.pipeline_mode<synchronous>, transform_indices = @transform_8, window_bounds = array<i64: 1, 32>}, {pipeline_mode = #tpu.pipeline_mode<synchronous>, transform_indices = @transform_9, window_bounds = array<i64: 32, 16>}, {pipeline_mode = #tpu.pipeline_mode<synchronous>, transform_indices = @transform_10, window_bounds = array<i64: 1, 16>}, {transform_indices = @transform_11, window_bounds = array<i64: 1, 8, 16>}, {pipeline_mode = #tpu.pipeline_mode<synchronous>, transform_indices = @transform_12, window_bounds = array<i64: 1, 8, 32>}, {pipeline_mode = #tpu.pipeline_mode<synchronous>, transform_indices = @transform_13, window_bounds = array<i64: 1, 8, 32>}]} {
    %c0_i32 = arith.constant 0 : i32
    %0 = arith.cmpi eq, %arg0, %c0_i32 : i32
    %1 = arith.extui %0 : i1 to i32
    %c0_i32_0 = arith.constant 0 : i32
    %2 = arith.cmpi ne, %1, %c0_i32_0 : i32
    scf.if %2 {
      %c0_43 = arith.constant 0 : index
      %c0_44 = arith.constant 0 : index
      %c0_45 = arith.constant 0 : index
      %67 = vector.load %arg2[%c0_43, %c0_44, %c0_45] : memref<1x8x32xf32, #tpu.memory_space<vmem>>, vector<1x8x32xf32>
      %68 = vector.shape_cast %67 : vector<1x8x32xf32> to vector<8x32xf32>
      %c0_46 = arith.constant 0 : index
      %c0_47 = arith.constant 0 : index
      %69 = vector.load %arg15[%c0_46, %c0_47] : memref<8x32xf32, #tpu.memory_space<vmem>>, vector<8x32xf32>
      tpu.vector_store %arg15[%c0_46, %c0_47], %68 {strides = array<i32>} : memref<8x32xf32, #tpu.memory_space<vmem>>, vector<8x32xf32>,
      %c0_48 = arith.constant 0 : index
      %c0_49 = arith.constant 0 : index
      %c0_50 = arith.constant 0 : index
      %70 = vector.load %arg3[%c0_48, %c0_49, %c0_50] : memref<1x8x32xf32, #tpu.memory_space<vmem>>, vector<1x8x32xf32>
      %71 = vector.shape_cast %70 : vector<1x8x32xf32> to vector<8x32xf32>
      %c0_51 = arith.constant 0 : index
      %c0_52 = arith.constant 0 : index
      %72 = vector.load %arg16[%c0_51, %c0_52] : memref<8x32xf32, #tpu.memory_space<vmem>>, vector<8x32xf32>
      tpu.vector_store %arg16[%c0_51, %c0_52], %71 {strides = array<i32>} : memref<8x32xf32, #tpu.memory_space<vmem>>, vector<8x32xf32>,
    } else {
    }
    %c0 = arith.constant 0 : index
    %c0_1 = arith.constant 0 : index
    %c0_2 = arith.constant 0 : index
    %3 = vector.load %arg1[%c0, %c0_1, %c0_2] : memref<1x8x16xf32, #tpu.memory_space<vmem>>, vector<1x8x16xf32>
    %4 = vector.shape_cast %3 : vector<1x8x16xf32> to vector<8x16xf32>
    %c0_3 = arith.constant 0 : index
    %c0_4 = arith.constant 0 : index
    %5 = vector.load %arg15[%c0_3, %c0_4] : memref<8x32xf32, #tpu.memory_space<vmem>>, vector<8x32xf32>
    %c0_5 = arith.constant 0 : index
    %c0_6 = arith.constant 0 : index
    %6 = vector.load %arg16[%c0_5, %c0_6] : memref<8x32xf32, #tpu.memory_space<vmem>>, vector<8x32xf32>
    %c0_7 = arith.constant 0 : index
    %c0_8 = arith.constant 0 : index
    %7 = vector.load %arg4[%c0_7, %c0_8] : memref<16x32xf32, #tpu.memory_space<vmem>>, vector<16x32xf32>
    %cst = arith.constant dense<0.000000e+00> : vector<8x32xf32>
    %8 = tpu.matmul %4, %7, %cst {dimension_numbers = #tpu.dot_dimension_numbers<[1], [0], [0], [1], [0, 0, 1, 1], [], []>} : vector<8x16xf32>, vector<16x32xf32>, vector<8x32xf32> -> vector<8x32xf32>
    %c0_9 = arith.constant 0 : index
    %c0_10 = arith.constant 0 : index
    %9 = vector.load %arg5[%c0_9, %c0_10] : memref<1x32xf32, #tpu.memory_space<vmem>>, vector<1x32xf32>
    %10 = vector.broadcast %9 : vector<1x32xf32> to vector<8x32xf32>
    %11 = arith.addf %8, %10 : vector<8x32xf32>
    %cst_11 = arith.constant 0.000000e+00 : f32
    %12 = vector.broadcast %cst_11 : f32 to vector<8x32xf32>
    %13 = arith.maximumf %11, %12 : vector<8x32xf32>
    %c0_12 = arith.constant 0 : index
    %c0_13 = arith.constant 0 : index
    %14 = vector.load %arg6[%c0_12, %c0_13] : memref<64x128xf32, #tpu.memory_space<vmem>>, vector<32x128xf32>
    %cst_14 = arith.constant dense<0.000000e+00> : vector<8x128xf32>
    %15 = tpu.matmul %13, %14, %cst_14 {dimension_numbers = #tpu.dot_dimension_numbers<[1], [0], [0], [1], [0, 0, 1, 1], [], []>} : vector<8x32xf32>, vector<32x128xf32>, vector<8x128xf32> -> vector<8x128xf32>
    %c32 = arith.constant 32 : index
    %c0_15 = arith.constant 0 : index
    %16 = vector.load %arg6[%c32, %c0_15] : memref<64x128xf32, #tpu.memory_space<vmem>>, vector<32x128xf32>
    %cst_16 = arith.constant dense<0.000000e+00> : vector<8x128xf32>
    %17 = tpu.matmul %5, %16, %cst_16 {dimension_numbers = #tpu.dot_dimension_numbers<[1], [0], [0], [1], [0, 0, 1, 1], [], []>} : vector<8x32xf32>, vector<32x128xf32>, vector<8x128xf32> -> vector<8x128xf32>
    %18 = arith.addf %15, %17 : vector<8x128xf32>
    %c0_17 = arith.constant 0 : index
    %c0_18 = arith.constant 0 : index
    %19 = vector.load %arg7[%c0_17, %c0_18] : memref<1x128xf32, #tpu.memory_space<vmem>>, vector<1x128xf32>
    %20 = vector.broadcast %19 : vector<1x128xf32> to vector<8x128xf32>
    %21 = arith.addf %18, %20 : vector<8x128xf32>
    %cst_19 = arith.constant 5.000000e-01 : f32
    %22 = vector.broadcast %cst_19 : f32 to vector<8x128xf32>
    %23 = arith.mulf %22, %21 : vector<8x128xf32>
    %24 = math.tanh %23 : vector<8x128xf32>
    %cst_20 = arith.constant 5.000000e-01 : f32
    %25 = vector.broadcast %cst_20 : f32 to vector<8x128xf32>
    %26 = arith.mulf %25, %24 : vector<8x128xf32>
    %cst_21 = arith.constant 5.000000e-01 : f32
    %27 = vector.broadcast %cst_21 : f32 to vector<8x128xf32>
    %28 = arith.addf %26, %27 : vector<8x128xf32>
    %29 = math.tanh %21 : vector<8x128xf32>
    %30 = vector.extract_strided_slice %28 {offsets = [0, 0], sizes = [8, 32], strides = [1, 1]} : vector<8x128xf32> to vector<8x32xf32>
    %31 = vector.extract_strided_slice %28 {offsets = [0, 32], sizes = [8, 32], strides = [1, 1]} : vector<8x128xf32> to vector<8x32xf32>
    %32 = vector.extract_strided_slice %29 {offsets = [0, 64], sizes = [8, 32], strides = [1, 1]} : vector<8x128xf32> to vector<8x32xf32>
    %33 = vector.extract_strided_slice %28 {offsets = [0, 96], sizes = [8, 32], strides = [1, 1]} : vector<8x128xf32> to vector<8x32xf32>
    %34 = arith.mulf %31, %6 : vector<8x32xf32>
    %35 = arith.mulf %30, %32 : vector<8x32xf32>
    %36 = arith.addf %34, %35 : vector<8x32xf32>
    %37 = math.tanh %36 : vector<8x32xf32>
    %38 = arith.mulf %33, %37 : vector<8x32xf32>
    %c0_22 = arith.constant 0 : index
    %c0_23 = arith.constant 0 : index
    %39 = vector.load %arg15[%c0_22, %c0_23] : memref<8x32xf32, #tpu.memory_space<vmem>>, vector<8x32xf32>
    tpu.vector_store %arg15[%c0_22, %c0_23], %38 {strides = array<i32>} : memref<8x32xf32, #tpu.memory_space<vmem>>, vector<8x32xf32>,
    %c0_24 = arith.constant 0 : index
    %c0_25 = arith.constant 0 : index
    %40 = vector.load %arg16[%c0_24, %c0_25] : memref<8x32xf32, #tpu.memory_space<vmem>>, vector<8x32xf32>
    tpu.vector_store %arg16[%c0_24, %c0_25], %36 {strides = array<i32>} : memref<8x32xf32, #tpu.memory_space<vmem>>, vector<8x32xf32>,
    %c0_26 = arith.constant 0 : index
    %c0_27 = arith.constant 0 : index
    %41 = vector.load %arg8[%c0_26, %c0_27] : memref<32x32xf32, #tpu.memory_space<vmem>>, vector<32x32xf32>
    %cst_28 = arith.constant dense<0.000000e+00> : vector<8x32xf32>
    %42 = tpu.matmul %38, %41, %cst_28 {dimension_numbers = #tpu.dot_dimension_numbers<[1], [0], [0], [1], [0, 0, 1, 1], [], []>} : vector<8x32xf32>, vector<32x32xf32>, vector<8x32xf32> -> vector<8x32xf32>
    %c0_29 = arith.constant 0 : index
    %c0_30 = arith.constant 0 : index
    %43 = vector.load %arg9[%c0_29, %c0_30] : memref<1x32xf32, #tpu.memory_space<vmem>>, vector<1x32xf32>
    %44 = vector.broadcast %43 : vector<1x32xf32> to vector<8x32xf32>
    %45 = arith.addf %42, %44 : vector<8x32xf32>
    %cst_31 = arith.constant 0.000000e+00 : f32
    %46 = vector.broadcast %cst_31 : f32 to vector<8x32xf32>
    %47 = arith.maximumf %45, %46 : vector<8x32xf32>
    %c0_32 = arith.constant 0 : index
    %c0_33 = arith.constant 0 : index
    %48 = vector.load %arg10[%c0_32, %c0_33] : memref<32x16xf32, #tpu.memory_space<vmem>>, vector<32x16xf32>
    %cst_34 = arith.constant dense<0.000000e+00> : vector<8x16xf32>
    %49 = tpu.matmul %47, %48, %cst_34 {dimension_numbers = #tpu.dot_dimension_numbers<[1], [0], [0], [1], [0, 0, 1, 1], [], []>} : vector<8x32xf32>, vector<32x16xf32>, vector<8x16xf32> -> vector<8x16xf32>
    %c0_35 = arith.constant 0 : index
    %c0_36 = arith.constant 0 : index
    %50 = vector.load %arg11[%c0_35, %c0_36] : memref<1x16xf32, #tpu.memory_space<vmem>>, vector<1x16xf32>
    %51 = vector.broadcast %50 : vector<1x16xf32> to vector<8x16xf32>
    %52 = arith.addf %49, %51 : vector<8x16xf32>
    %53 = arith.mulf %52, %52 : vector<8x16xf32>
    %cst_37 = arith.constant dense<0.000000e+00> : vector<8xf32>
    %54 = vector.multi_reduction <add>, %53, %cst_37 [1] : vector<8x16xf32> to vector<8xf32>
    %55 = vector.shape_cast %54 : vector<8xf32> to vector<8x1xf32>
    %cst_38 = arith.constant 1.000000e-24 : f32
    %56 = vector.broadcast %cst_38 : f32 to vector<8x1xf32>
    %57 = arith.maximumf %55, %56 : vector<8x1xf32>
    %58 = math.rsqrt %57 : vector<8x1xf32>
    %59 = vector.broadcast %58 : vector<8x1xf32> to vector<8x16xf32>
    %60 = arith.mulf %52, %59 : vector<8x16xf32>
    %c0_39 = arith.constant 0 : index
    %c0_40 = arith.constant 0 : index
    %c0_41 = arith.constant 0 : index
    %61 = vector.load %arg12[%c0_39, %c0_40, %c0_41] : memref<1x8x16xf32, #tpu.memory_space<vmem>>, vector<1x8x16xf32>
    %62 = vector.shape_cast %61 : vector<1x8x16xf32> to vector<8x16xf32>
    %63 = vector.shape_cast %60 : vector<8x16xf32> to vector<1x8x16xf32>
    tpu.vector_store %arg12[%c0_39, %c0_40, %c0_41], %63 {strides = array<i32>} : memref<1x8x16xf32, #tpu.memory_space<vmem>>, vector<1x8x16xf32>,
    %c3_i32 = arith.constant 3 : i32
    %64 = arith.cmpi eq, %arg0, %c3_i32 : i32
    %65 = arith.extui %64 : i1 to i32
    %c0_i32_42 = arith.constant 0 : i32
    %66 = arith.cmpi ne, %65, %c0_i32_42 : i32
    scf.if %66 {
      %c0_43 = arith.constant 0 : index
      %c0_44 = arith.constant 0 : index
      %c0_45 = arith.constant 0 : index
      %67 = vector.load %arg13[%c0_43, %c0_44, %c0_45] : memref<1x8x32xf32, #tpu.memory_space<vmem>>, vector<1x8x32xf32>
      %68 = vector.shape_cast %67 : vector<1x8x32xf32> to vector<8x32xf32>
      %69 = vector.shape_cast %38 : vector<8x32xf32> to vector<1x8x32xf32>
      tpu.vector_store %arg13[%c0_43, %c0_44, %c0_45], %69 {strides = array<i32>} : memref<1x8x32xf32, #tpu.memory_space<vmem>>, vector<1x8x32xf32>,
      %c0_46 = arith.constant 0 : index
      %c0_47 = arith.constant 0 : index
      %c0_48 = arith.constant 0 : index
      %70 = vector.load %arg14[%c0_46, %c0_47, %c0_48] : memref<1x8x32xf32, #tpu.memory_space<vmem>>, vector<1x8x32xf32>
      %71 = vector.shape_cast %70 : vector<1x8x32xf32> to vector<8x32xf32>
      %72 = vector.shape_cast %36 : vector<8x32xf32> to vector<1x8x32xf32>
      tpu.vector_store %arg14[%c0_46, %c0_47, %c0_48], %72 {strides = array<i32>} : memref<1x8x32xf32, #tpu.memory_space<vmem>>, vector<1x8x32xf32>,
    } else {
    }
    return
  }
  func.func @transform_0(%arg0: i32) -> (i32, i32, i32) {
    %c0_i32 = arith.constant 0 : i32
    %c0_i32_0 = arith.constant 0 : i32
    %c0_i32_1 = arith.constant 0 : i32
    return %arg0, %c0_i32, %c0_i32_0 : i32, i32, i32
  }
  func.func @transform_1(%arg0: i32) -> (i32, i32, i32) {
    %c0_i32 = arith.constant 0 : i32
    %c0_i32_0 = arith.constant 0 : i32
    %c0_i32_1 = arith.constant 0 : i32
    %c0_i32_2 = arith.constant 0 : i32
    return %c0_i32, %c0_i32_0, %c0_i32_1 : i32, i32, i32
  }
  func.func @transform_2(%arg0: i32) -> (i32, i32, i32) {
    %c0_i32 = arith.constant 0 : i32
    %c0_i32_0 = arith.constant 0 : i32
    %c0_i32_1 = arith.constant 0 : i32
    %c0_i32_2 = arith.constant 0 : i32
    return %c0_i32, %c0_i32_0, %c0_i32_1 : i32, i32, i32
  }
  func.func @transform_3(%arg0: i32) -> (i32, i32) {
    %c0_i32 = arith.constant 0 : i32
    %c0_i32_0 = arith.constant 0 : i32
    %c0_i32_1 = arith.constant 0 : i32
    return %c0_i32, %c0_i32_0 : i32, i32
  }
  func.func @transform_4(%arg0: i32) -> (i32, i32) {
    %c0_i32 = arith.constant 0 : i32
    %c0_i32_0 = arith.constant 0 : i32
    %c0_i32_1 = arith.constant 0 : i32
    return %c0_i32, %c0_i32_0 : i32, i32
  }
  func.func @transform_5(%arg0: i32) -> (i32, i32) {
    %c0_i32 = arith.constant 0 : i32
    %c0_i32_0 = arith.constant 0 : i32
    %c0_i32_1 = arith.constant 0 : i32
    return %c0_i32, %c0_i32_0 : i32, i32
  }
  func.func @transform_6(%arg0: i32) -> (i32, i32) {
    %c0_i32 = arith.constant 0 : i32
    %c0_i32_0 = arith.constant 0 : i32
    %c0_i32_1 = arith.constant 0 : i32
    return %c0_i32, %c0_i32_0 : i32, i32
  }
  func.func @transform_7(%arg0: i32) -> (i32, i32) {
    %c0_i32 = arith.constant 0 : i32
    %c0_i32_0 = arith.constant 0 : i32
    %c0_i32_1 = arith.constant 0 : i32
    return %c0_i32, %c0_i32_0 : i32, i32
  }
  func.func @transform_8(%arg0: i32) -> (i32, i32) {
    %c0_i32 = arith.constant 0 : i32
    %c0_i32_0 = arith.constant 0 : i32
    %c0_i32_1 = arith.constant 0 : i32
    return %c0_i32, %c0_i32_0 : i32, i32
  }
  func.func @transform_9(%arg0: i32) -> (i32, i32) {
    %c0_i32 = arith.constant 0 : i32
    %c0_i32_0 = arith.constant 0 : i32
    %c0_i32_1 = arith.constant 0 : i32
    return %c0_i32, %c0_i32_0 : i32, i32
  }
  func.func @transform_10(%arg0: i32) -> (i32, i32) {
    %c0_i32 = arith.constant 0 : i32
    %c0_i32_0 = arith.constant 0 : i32
    %c0_i32_1 = arith.constant 0 : i32
    return %c0_i32, %c0_i32_0 : i32, i32
  }
  func.func @transform_11(%arg0: i32) -> (i32, i32, i32) {
    %c0_i32 = arith.constant 0 : i32
    %c0_i32_0 = arith.constant 0 : i32
    %c0_i32_1 = arith.constant 0 : i32
    return %arg0, %c0_i32, %c0_i32_0 : i32, i32, i32
  }
  func.func @transform_12(%arg0: i32) -> (i32, i32, i32) {
    %c0_i32 = arith.constant 0 : i32
    %c0_i32_0 = arith.constant 0 : i32
    %c0_i32_1 = arith.constant 0 : i32
    %c0_i32_2 = arith.constant 0 : i32
    return %c0_i32, %c0_i32_0, %c0_i32_1 : i32, i32, i32
  }
  func.func @transform_13(%arg0: i32) -> (i32, i32, i32) {
    %c0_i32 = arith.constant 0 : i32
    %c0_i32_0 = arith.constant 0 : i32
    %c0_i32_1 = arith.constant 0 : i32
    %c0_i32_2 = arith.constant 0 : i32
    return %c0_i32, %c0_i32_0, %c0_i32_1 : i32, i32, i32
  }
}

</mosaic_0001>

<bundles_post_ra>
// kernel: tpu_custom_call.1
= control target key start
LH: loop header
LB: loop body
LE: loop exit
PB: predicated region body
PF: predicated region fallthrough
CT: control target
= control target key end

     0   :  { %s2215_s0 = inlined_call_operand.vmem [shape: f32[4,8,16], index: 0, kind: input, shape index: {}]   ;;  %s2216_s1 = inlined_call_operand.hbm [shape: f32[1,8,32], index: 1, kind: input, shape index: {}, may-alias: {1,12}]   ;;  %s2217_s2 = inlined_call_operand.hbm [shape: f32[1,8,32], index: 2, kind: input, shape index: {}, may-alias: {2,13}]   ;;  %s2218_s3 = inlined_call_operand.hbm [shape: f32[16,32], index: 3, kind: input, shape index: {}]   ;;  %s2219_s4 = inlined_call_operand.vmem [shape: f32[1,32], index: 4, kind: input, shape index: {}]   ;;  %s2220_s5 = inlined_call_operand.vmem [shape: f32[64,128], index: 5, kind: input, shape index: {}]   ;;  %s2221_s6 = inlined_call_operand.vmem [shape: f32[1,128], index: 6, kind: input, shape index: {}]   ;;  %s2222_s7 = inlined_call_operand.hbm [shape: f32[32,32], index: 7, kind: input, shape index: {}]   ;;  %s2223_s8 = inlined_call_operand.hbm [shape: f32[1,32], index: 8, kind: input, shape index: {}]   ;;  %s2224_s9 = inlined_call_operand.vmem [shape: f32[32,16], index: 9, kind: input, shape index: {}]   ;;  %s2225_s10 = inlined_call_operand.hbm [shape: f32[1,16], index: 10, kind: input, shape index: {}]   ;;  %s2226_s11 = inlined_call_operand.hbm [shape: f32[4,8,16], index: 11, kind: output, shape index: {0}]   ;;  %s2227_s12 = inlined_call_operand.hbm [shape: f32[1,8,32], index: 12, kind: output, shape index: {1}, may-alias: {1,12}]   ;;  %s2228_s13 = inlined_call_operand.hbm [shape: f32[1,8,32], index: 13, kind: output, shape index: {2}, may-alias: {2,13}]  }
   0x1   :  { %2242 = sst [smem:[#allocation31_spill]] %s2217_s2 }
   0x2   :  { %2243 = sst [smem:[#allocation32_spill]] %s2228_s13 }
   0x3   :  { %19 = vsyncpa [#allocation5], 0 }
   0x4   :  { %20 = vsyncpa [#allocation8], 0 }
   0x5   :  { %21 = vsyncpa [#allocation11], 0 }
   0x6   :  { %22 = vsyncpa [#allocation14], 0 }
   0x7   :  { %23 = vsyncpa [#allocation6], 0 }
   0x8   :  { %25 = vsyncpa [#allocation6 + $0x1], 0 }
   0x9   :  { %26 = vsyncpa [#allocation17], 0  ;;  %s1824_s25 = smov 0   ;;  %s1826_s26 = smov 0  }
   0xa   :  { %s1828_s27 = smov 0   ;;  %s1830_s28 = smov 0  }
   0xb LB: > { %2244 = sst [smem:[#allocation25_spill]] %s1723_s25  ;;  %s1845_s29 = sadd.s32 4294967295, %s1735_s28   ;;  %s1735_s28 = sphi %s1830_s28, %s2282_s28   ;;  %s1731_s27 = sphi %s1828_s27, %s2284_s27   ;;  %s1727_s26 = sphi %s1826_s26, %s2286_s26   ;;  %s1723_s25 = sphi %s1824_s25, %s2285_s25  }
   0xc   : > { %2245 = sst [smem:[#allocation26_spill]] %s1731_s27  ;;  %s1165_s30 = sadd.s32 4294967294, %s1735_s28  }
   0xd   : > { %2246 = sst [smem:[#allocation27_spill]] %s1735_s28  ;;  %s1849_s14 = sadd.s32 1, %s1735_s28  }
   0xe   : > { %2247 = sst [smem:[#allocation28_spill]] %s1849_s14  ;;  %s275_s15 = sadd.s32 1, %s1731_s27 }
   0xf   : > { %s272_s16 = ssub.s32 %s1735_s28, %s1849_s14  ;;  %p285_p0 = scmp.ne.s32.totalorder %s1731_s27, %s1727_s26 }
  0x10   : > { %p273_p1 = scmp.eq.s32.totalorder %s272_s16, 0  ;;  %p2234_p2 = scmp.eq.s32.totalorder %s1845_s29, 3 }
  0x11   : > { %p291_p3 = scmp.ne.s32.totalorder %s1727_s26, %s1723_s25  ;;  %p292_p4 = scmp.eq.s32.totalorder %s1165_s30, 3 }
  0x12   : > { %s1860_s17 = scalar_select %p273_p1, %s1731_s27, %s275_s15  }
  0x13   : > { %p1864_p5 = por %p2234_p2, %p285_p0  ;;  %p1868_p6 = por %p292_p4, %p291_p3 }
  0x14   : > { %2248 = sst [smem:[#allocation29_spill]] %s1860_s17  ;;  %p1166_p7 = scmp.ge.s32.totalorder %s1735_s28, 1 }
  0x15   : > { %s2249_s18 = scalar_select %p1864_p5, 1, 0 }
  0x16   : > { %s2250_s19 = scalar_select %p1868_p6, 1, 0 }
  0x17   : > { %p341_p8 = scmp.lt.s32.totalorder %s1735_s28, 5  ;;  %p2235_p10 = scmp.eq.s32.totalorder %s1845_s29, 0 }
  0x18   : > { %2251 = sst [smem:[#allocation30_spill]] %s2250_s19  ;;  %s1737_s21 = smov [#allocation7]  }
  0x19   : > { %p1876_p11 = pnand %p1166_p7, %p341_p8  ;;  %s365_s22 = sshll.u32 %s1737_s21, 4  ;;  %s366_s22 = int_to_ptr.vmem [resolvable:$true] %s365_s22 }
  0x1a   : > { %s1738_s24 = smov [#allocation10]   ;;  %s1739_s15 = smov [#allocation4]  }
  0x1b   : > { %s2252_s20 = scalar_select %p1876_p11, 1, 0 }
  0x1c   : > { %p1337_p12 = pneg %p1876_p11  ;;  %s397_s30 = sshll.u32 %s1738_s24, 4  ;;  %s1888_s30 = int_to_ptr.vmem [resolvable:$true] %s397_s30 }
  0x1d   : > { %s1890_s16 = sshll.u32 %s1739_s15, 4  ;;  %s2254_s2 = sld [smem:[#allocation31_spill]]  ;;  %s355_s16 = int_to_ptr.vmem [resolvable:$true] %s1890_s16 }
  0x1e   : > { %p1884_p13 = pnand %p2235_p10, %p1337_p12 }
  0x20   : > { %p1900_p1 = pneg %p1884_p13 }
  0x23   : > { %s1433_s21 = scalar_lea.hbm %s2254_s2, 128 }
  0x24   : > { %p1434_p0 = scmp.ne.s32.totalorder %s2254_s2, %s1433_s21  ;;  %p1440_p7 = scmp.lt.u32.totalorder %s1433_s21, %s2254_s2 }
  0x26   : > { %p1436_p3 = pnand %p1900_p1, %p1434_p0 }
  0x28   : > { %p1437_p4 = pneg %p1436_p3 }
  0x2a   : > { %p1442_p8 = pnand %p1440_p7, %p1437_p4 }
  0x2c   : > { %1445 = shalt.err (!%p1442_p8)
}
  0x2d   : > { %s1446_s27 = scalar_lea.vmem %s366_s22, 128  ;;  %p1454_p10 = scmp.lt.s32.totalorder %s366_s22, %s366_s22 }
  0x2e   : > { %p1447_p12 = scmp.ne.s32.totalorder %s366_s22, %s1446_s27  ;;  %p1455_p6 = scmp.lt.s32.totalorder %s1446_s27, %s1446_s27 }
  0x30   : > { %p1449_p2 = pnand %p1447_p12, %p1900_p1  ;;  %p1456_p5 = por %p1455_p6, %p1454_p10 }
  0x32   : > { %p1450_p9 = pneg %p1449_p2 }
  0x34   : > { %p1457_p11 = pnand %p1456_p5, %p1450_p9 }
  0x36   : > { %1460 = shalt.err (!%p1457_p11)
}
  0x37   : > { %1343 = dma.hbm_to_vmem [thread:$0]  (!%p1884_p13), %s2254_s2, 128, %s366_s22, [#allocation8]  }
  0x38   : > { %s1461_s24 = scalar_lea.hbm %s2222_s7, 512 }
  0x39   : > { %p1462_p2 = scmp.ne.s32.totalorder %s2222_s7, %s1461_s24  ;;  %p1468_p5 = scmp.lt.u32.totalorder %s1461_s24, %s2222_s7 }
  0x3b   : > { %p1464_p0 = pnand %p1462_p2, %p1900_p1 }
  0x3d   : > { %p1465_p6 = pneg %p1464_p0 }
  0x3f   : > { %p1470_p9 = pnand %p1468_p5, %p1465_p6 }
  0x41   : > { %1473 = shalt.err (!%p1470_p9)
}
  0x42   : > { %s1474_s22 = scalar_lea.vmem %s1888_s30, 512  ;;  %p1482_p4 = scmp.lt.s32.totalorder %s1888_s30, %s1888_s30 }
  0x43   : > { %p1475_p10 = scmp.ne.s32.totalorder %s1888_s30, %s1474_s22  ;;  %p1483_p7 = scmp.lt.s32.totalorder %s1474_s22, %s1474_s22 }
  0x45   : > { %p1477_p11 = pnand %p1475_p10, %p1900_p1  ;;  %p1484_p8 = por %p1483_p7, %p1482_p4 }
  0x47   : > { %p1478_p3 = pneg %p1477_p11 }
  0x49   : > { %p1485_p12 = pnand %p1484_p8, %p1478_p3 }
  0x4b   : > { %1488 = shalt.err (!%p1485_p12)
}
  0x4c   : > { %s2240_s28 = smov 128   ;;  %s2241_s13 = smov 8  }
  0x4d   : > { %1349 = dma.hbm_to_vmem [thread:$0]  (!%p1884_p13), %s2222_s7, 512, %s1888_s30, [#allocation11], %s2240_s28, %s2240_s28, %s2241_s13  }
  0x4e   : > { %s1489_s24 = scalar_lea.hbm %s2216_s1, 128 }
  0x4f   : > { %p1490_p2 = scmp.ne.s32.totalorder %s2216_s1, %s1489_s24  ;;  %p1496_p5 = scmp.lt.u32.totalorder %s1489_s24, %s2216_s1 }
  0x51   : > { %p1492_p0 = pnand %p1490_p2, %p1900_p1 }
  0x53   : > { %p1493_p6 = pneg %p1492_p0 }
  0x55   : > { %p1498_p9 = pnand %p1496_p5, %p1493_p6 }
  0x57   : > { %1501 = shalt.err (!%p1498_p9)
}
  0x58   : > { %s1502_s14 = scalar_lea.vmem %s355_s16, 128  ;;  %p1510_p4 = scmp.lt.s32.totalorder %s355_s16, %s355_s16 }
  0x59   : > { %p1503_p10 = scmp.ne.s32.totalorder %s355_s16, %s1502_s14  ;;  %p1511_p7 = scmp.lt.s32.totalorder %s1502_s14, %s1502_s14 }
  0x5b   : > { %p1505_p11 = pnand %p1503_p10, %p1900_p1  ;;  %p1512_p8 = por %p1511_p7, %p1510_p4 }
  0x5d   : > { %p1506_p3 = pneg %p1505_p11 }
  0x5f   : > { %p1513_p12 = pnand %p1512_p8, %p1506_p3 }
  0x61   : > { %1516 = shalt.err (!%p1513_p12)
}
  0x62   : > { %1340 = dma.hbm_to_vmem [thread:$0]  (!%p1884_p13), %s2216_s1, 128, %s355_s16, [#allocation5]  }
  0x63   : > { %s1742_s2 = smov [#allocation9]   ;;  %s1743_s21 = smov [#allocation12]  }
  0x64   : > { %s375_s19 = sshll.u32 %s1742_s2, 4  ;;  %s411_s24 = sshll.u32 %s1743_s21, 4  ;;  %s376_s19 = int_to_ptr.vmem [resolvable:$true] %s375_s19  ;;  %s412_s24 = int_to_ptr.vmem [resolvable:$true] %s411_s24 }
  0x65   : > { %s1517_s22 = scalar_lea.hbm %s2218_s3, 256 }
  0x66   : > { %p1518_p2 = scmp.ne.s32.totalorder %s2218_s3, %s1517_s22  ;;  %p1524_p5 = scmp.lt.u32.totalorder %s1517_s22, %s2218_s3 }
  0x68   : > { %p1520_p0 = pnand %p1518_p2, %p1900_p1 }
  0x6a   : > { %p1521_p6 = pneg %p1520_p0 }
  0x6c   : > { %p1526_p9 = pnand %p1524_p5, %p1521_p6 }
  0x6e   : > { %1529 = shalt.err (!%p1526_p9)
}
  0x6f   : > { %s1530_s16 = scalar_lea.vmem %s376_s19, 256  ;;  %p1538_p4 = scmp.lt.s32.totalorder %s376_s19, %s376_s19 }
  0x70   : > { %p1531_p10 = scmp.ne.s32.totalorder %s376_s19, %s1530_s16  ;;  %p1539_p7 = scmp.lt.s32.totalorder %s1530_s16, %s1530_s16 }
  0x72   : > { %p1533_p11 = pnand %p1531_p10, %p1900_p1  ;;  %p1540_p8 = por %p1539_p7, %p1538_p4 }
  0x74   : > { %p1534_p3 = pneg %p1533_p11 }
  0x76   : > { %p1541_p12 = pnand %p1540_p8, %p1534_p3 }
  0x78   : > { %1544 = shalt.err (!%p1541_p12)
}
  0x79   : > { %s2256_s28 = smov 8   ;;  %s2257_s17 = smov 128  }
  0x7a   : > { %1346 = dma.hbm_to_vmem [thread:$0]  (!%p1884_p13), %s2218_s3, 256, %s376_s19, [#allocation8], %s2257_s17, %s2257_s17, %s2256_s28  }
  0x7b   : > { %s1545_s27 = scalar_lea.hbm %s2223_s8, 16 }
  0x7c   : > { %p1546_p2 = scmp.ne.s32.totalorder %s2223_s8, %s1545_s27  ;;  %p1552_p5 = scmp.lt.u32.totalorder %s1545_s27, %s2223_s8 }
  0x7e   : > { %p1548_p0 = pnand %p1546_p2, %p1900_p1 }
  0x80   : > { %p1549_p6 = pneg %p1548_p0 }
  0x82   : > { %p1554_p9 = pnand %p1552_p5, %p1549_p6 }
  0x84   : > { %1557 = shalt.err (!%p1554_p9)
}
  0x85   : > { %s1558_s13 = scalar_lea.vmem %s412_s24, 16  ;;  %s1565_s19 = scalar_lea.vmem %s412_s24, 32 }
  0x86   : > { %p1559_p10 = scmp.ne.s32.totalorder %s412_s24, %s1558_s13  ;;  %p1566_p4 = scmp.lt.s32.totalorder %s412_s24, %s412_s24 }
  0x87   : > { %p1567_p7 = scmp.lt.s32.totalorder %s1565_s19, %s1558_s13 }
  0x88   : > { %p1561_p11 = pnand %p1559_p10, %p1900_p1 }
  0x89   : > { %p1568_p8 = por %p1567_p7, %p1566_p4 }
  0x8a   : > { %p1562_p3 = pneg %p1561_p11 }
  0x8c   : > { %p1569_p12 = pnand %p1568_p8, %p1562_p3 }
  0x8e   : > { %1572 = shalt.err (!%p1569_p12)
}
  0x8f   : > { %1352 = dma.hbm_to_vmem [thread:$0]  (!%p1884_p13), %s2223_s8, 16, %s412_s24, [#allocation11]  }
  0x90   : > { %s1744_s2 = smov [#allocation13]   ;;  %s1573_s22 = scalar_lea.hbm %s2225_s10, 16 }
  0x91   : > { %s425_s21 = sshll.u32 %s1744_s2, 4  ;;  %p1574_p2 = scmp.ne.s32.totalorder %s2225_s10, %s1573_s22  ;;  %s426_s21 = int_to_ptr.vmem [resolvable:$true] %s425_s21 }
  0x92   : > { %p1580_p5 = scmp.lt.u32.totalorder %s1573_s22, %s2225_s10 }
  0x93   : > { %p1576_p0 = pnand %p1574_p2, %p1900_p1 }
  0x95   : > { %p1577_p6 = pneg %p1576_p0 }
  0x97   : > { %p1582_p9 = pnand %p1580_p5, %p1577_p6 }
  0x99   : > { %1585 = shalt.err (!%p1582_p9)
}
  0x9a   : > { %s1586_s24 = scalar_lea.vmem %s426_s21, 16  ;;  %s1593_s19 = scalar_lea.vmem %s426_s21, 32 }
  0x9b   : > { %p1587_p10 = scmp.ne.s32.totalorder %s426_s21, %s1586_s24  ;;  %p1594_p4 = scmp.lt.s32.totalorder %s426_s21, %s426_s21 }
  0x9c   : > { %p1595_p7 = scmp.lt.s32.totalorder %s1593_s19, %s1586_s24 }
  0x9d   : > { %p1589_p11 = pnand %p1587_p10, %p1900_p1 }
  0x9e   : > { %p1596_p8 = por %p1595_p7, %p1594_p4 }
  0x9f   : > { %p1590_p3 = pneg %p1589_p11 }
  0xa1   : > { %p1597_p12 = pnand %p1596_p8, %p1590_p3 }
  0xa3   : > { %1600 = shalt.err (!%p1597_p12)
}
  0xa4   : > { %1355 = dma.hbm_to_vmem [thread:$0]  (!%p1884_p13), %s2225_s10, 16, %s426_s21, [#allocation14]  }
  0xa5   : > { %p2258_p2 = scmp.ne.s32.totalorder %s2252_s20, 0 }
  0xa6   : > { %p2259_p0 = scmp.eq.s32.totalorder (!%p2258_p2), %s1845_s29, 0 }
  0xa7   : > { %445 = sbr.rel (%p2258_p2) target bundleno = 1792 (0x700), region = 64 }
  0xae   : > { %1698 = dma.done.wait (%p2259_p0), [#allocation5], 128   ;;  %p2260_p1 = pmov %p2259_p0 }
  0xaf   : > { %p2261_p6 = pmov %p2259_p0 }
  0xb0   : > { %1700 = vsyncadd (%p2260_p1), [#allocation5], 4294967168 }
  0xb1   : > { %1702 = dma.done.wait (%p2261_p6), [#allocation8], 384   ;;  %p2262_p5 = pmov %p2259_p0 }
  0xb2   : > { %p2263_p9 = pmov %p2259_p0 }
  0xb3   : > { %1704 = vsyncadd (%p2262_p5), [#allocation8], 4294966912 }
  0xb4   : > { %1706 = dma.done.wait (%p2263_p9), [#allocation11], 528   ;;  %p2264_p13 = pmov %p2259_p0 }
  0xb5   : > { %p2265_p10 = pmov %p2259_p0 }
  0xb6   : > { %1708 = vsyncadd (%p2264_p13), [#allocation11], 4294966768 }
  0xb7   : > { %1710 = dma.done.wait (%p2265_p10), [#allocation14], 16   ;;  %p2266_p11 = pmov %p2259_p0 }
  0xb8   : > { %s501_s25 = sand.u32 1, %s1727_s26   ;;  %p508_p3 = scmp.lt.s32.totalorder %s1845_s29, 3 }
  0xb9   : > { %1712 = vsyncadd (%p2266_p11), [#allocation14], 4294967280  ;;  %s2040_s20 = sshll.u32 %s501_s25, 3  ;;  %p2267_p4 = scmp.ne.s32.totalorder %s1845_s29, 0 }
  0xba   : > { %s509_s23 = scalar_select %p508_p3, %s1845_s29, 3 }
  0xbb   : > { %s503_s22 = scalar_lea.vmem [#allocation15], %s2040_s20  ;;  %515 = sbr.rel (%p2267_p4) target bundleno = 194 (0xc2), region = 92  ;;  %v516_v0 = vld [vmem:[#allocation4] sm:$0xff] (!%p2267_p4)  ;;  %vm517_vm0 = vcmask (!%p2267_p4), 261120   ;;  %v519_v1 = vld [vmem:[#allocation7] sm:$0xff] (!%p2267_p4) }
  0xbc   : > { %s1182_s2 = sshll.u32 %s509_s23, 3  ;;  %518 = vst.msk [vmem:[#allocation2] sm:$0xff] (!%p2267_p4), %vm517_vm0, %v516_v0  ;;  %520 = vst.msk [vmem:[#allocation3] sm:$0xff] (!%p2267_p4), %vm517_vm0, %v519_v1 }
  0xbd   : > { %s511_s27 = scalar_lea.vmem %s2215_s0, %s1182_s2 }
  0xc2 PF: > { %v524_v2 = vld [vmem:[#allocation9] sm:$0xff]  ;;  %v525_v3 = vld [vmem:[#allocation9 + $0x8] sm:$0xff]  ;;  %v1745_v4 = vmov 0.0|0.0   ;;  %vm1746_vm1 = vmmov 0   ;;  %v1747_v6 = vmov 0.0   ;;  %vm533_vm2 = vcmask 130048  }
  0xc3   : > { %1276 = vmatprep.subr.bf16.mxu0 %v1745_v4  ;;  %v1277_v5 = vpack.c.bf16 %v525_v3, %v524_v2  ;;  %1229 = vmatprep.mubr.msk.f32.mxu0 %vm1746_vm1, %v1747_v6  ;;  %v612_v7 = vld [vmem:[%s2220_s5 + $0x20] sm:$0xff]  ;;  %v613_v8 = vld [vmem:[%s2220_s5 + $0x28] sm:$0xff]  ;;  %v614_v14 = vld [vmem:[%s2220_s5 + $0x30] sm:$0xff]  ;;  %vm616_vm3 = vcmask 261120   ;;  %s1748_s17 = smov 64   ;;  %s1749_s23 = smov 32  }
  0xc4   : > { %v608_v9 = vld [vmem:[%s2220_s5] sm:$0xff]  ;;  %1279 = vmatprep.subr.bf16.mxu1 %v1745_v4  ;;  %v1280_v10 = vpack.c.bf16 %v613_v8, %v612_v7  ;;  %v609_v11 = vld [vmem:[%s2220_s5 + $0x8] sm:$0xff]  ;;  %1240 = vmatprep.mubr.msk.f32.mxu1 %vm1746_vm1, %v1747_v6  ;;  %v615_v15 = vld [vmem:[%s2220_s5 + $0x38] sm:$0xff]  ;;  %s1750_s14 = smov 96   ;;  %p1193_p7 = scmp.ne.s32.totalorder %s1845_s29, 3 }
  0xc5   : > { %1278 = vmatpush3.bf16.msra.mxu0 %v1277_v5  ;;  %v521_v12 = vld [vmem:[%s511_s27] sm:$0xff]  ;;  %v1286_v13 = vpack.c.bf16 %v609_v11, %v608_v9  ;;  %v1283_v16 = vpack.c.bf16 %v615_v15, %v614_v14  ;;  %v610_v17 = vld [vmem:[%s2220_s5 + $0x10] sm:$0xff]  ;;  %v611_v18 = vld [vmem:[%s2220_s5 + $0x18] sm:$0xff] }
  0xc6   : > { %1281 = vmatpush3.bf16.msra.mxu1 %v1280_v10  ;;  %1285 = vmatprep.subr.bf16.mxu0 %v1745_v4  ;;  %v1289_v19 = vpack.c.bf16 %v611_v18, %v610_v17  ;;  %v522_v20 = vld [vmem:[#allocation2] sm:$0xff]  ;;  %v523_v34 = vld [vmem:[#allocation3] sm:$0xff]  ;;  %v807_v45 = vld [vmem:[#allocation10] sm:$0xff] }
  0xc7   : > { %1282 = vmatprep.subr.bf16.mxu1 %v1745_v4  ;;  %v1184_v21 = vld [vmem:[%s2219_s4] ss:$0 sm:$0xff]  ;;  %v808_v46 = vld [vmem:[#allocation10 + $0x8] sm:$0xff]  ;;  %v810_v49 = vld [vmem:[#allocation10 + $0x18] sm:$0xff] }
  0xc8   : > { %1230 = vmatmul.mubr.msk.f32.vlgmr.msra.gmra.mrb[0].mxu0 %vm533_vm2, %v521_v12  ;;  %v1188_v29 = vld [vmem:[%s2221_s6] ss:$0 sm:$0xff]  ;;  %v1292_v48 = vpack.c.bf16 %v808_v46, %v807_v45  ;;  %v892_v53 = vld [vmem:[%s2224_s9 + $0x8] sm:$0xff]  ;;  %v893_v59 = vld [vmem:[%s2224_s9 + $0x10] sm:$0xff] }
  0xc9   : > { %1287 = vmatpush3.bf16.msra.mxu0 %v1286_v13  ;;  %1251 = vmatprep.mubr.msk.f32.mxu0 %vm1746_vm1, %v1747_v6  ;;  %v809_v47 = vld [vmem:[#allocation10 + $0x10] sm:$0xff]  ;;  %v894_v60 = vld [vmem:[%s2224_s9 + $0x18] sm:$0xff]  ;;  %v1189_v62 = vld [vmem:[#allocation12] ss:$0 sm:$0xff] }
  0xca   : > { %1288 = vmatprep.subr.bf16.mxu0 %v1745_v4  ;;  %1284 = vmatpush3.bf16.msra.mxu1 %v1283_v16  ;;  %v1295_v50 = vpack.c.bf16 %v810_v49, %v809_v47  ;;  %v891_v52 = vld [vmem:[%s2224_s9] sm:$0xff]  ;;  %v1301_v61 = vpack.c.bf16 %v894_v60, %v893_v59  ;;  %v1191_v3 = vld [vmem:[#allocation13] ss:$0 sm:$0xff] }
  0xcb   : > { %1291 = vmatprep.subr.bf16.mxu1 %v1745_v4  ;;  %v1298_v54 = vpack.c.bf16 %v892_v53, %v891_v52 }
  0xcd   : > { %1290 = vmatpush3.bf16.msra.mxu0 %v1289_v19  ;;  %1241 = vmatmul.mubr.msk.f32.vlgmr.msra.gmra.mrb[0].mxu1 %vm616_vm3, %v522_v20 }
  0xce   : > { %1297 = vmatprep.subr.bf16.mxu0 %v1745_v4  ;;  %1262 = vmatprep.mubr.msk.f32.mxu1 %vm1746_vm1, %v1747_v6 }
  0xcf   : > { %1293 = vmatpush3.bf16.msra.mxu1 %v1292_v48 }
  0xd0   : > { %1294 = vmatprep.subr.bf16.mxu1 %v1745_v4 }
  0xd3   : > { %1296 = vmatpush3.bf16.msra.mxu1 %v1295_v50 }
 0x19b   : > { %v603_v22 = vpop.f32.mrb[0].mxu0 }
 0x19c   : > { %v604_v23 = vadd.f32 %v1184_v21, %v603_v22  ;;  %v1231_v24 = vpop.f32.mrb[1].mxu0 }
 0x19e   : > { %v607_v25 = vmax.f32 %v604_v23, 0.0 }
 0x1a0   : > { %1252 = vmatmul.mubr.msk.f32.vlgmr.msra.gmra.mrb[2].mxu0 %vm616_vm3, %v607_v25  ;;  %v686_v26 = vpop.f32.mrb[0].mxu1 }
 0x1a1   : > { %1273 = vmatprep.mubr.msk.f32.mxu0 %vm1746_vm1, %v1747_v6  ;;  %v1242_v27 = vpop.f32.mrb[1].mxu1  ;;  %1299 = vmatpush3.bf16.msra.mxu0 %v1298_v54 }
 0x1a2   : > { %1300 = vmatprep.subr.bf16.mxu0 %v1745_v4 }
 0x1a5   : > { %1302 = vmatpush3.bf16.msra.mxu0 %v1301_v61 }
 0x273   : > { %v759_v28 = vpop.f32.mrb[2].mxu0 }
 0x274   : > { %v760_v30 = vadd.f32 %v759_v28, %v686_v26  ;;  %v1253_v31 = vpop.f32.mrb[3].mxu0 }
 0x276   : > { %v770_v32 = vadd.f32 %v1188_v29, %v760_v30 }
 0x278   : > { %1425 = vtanh.f32 %v770_v32  ;;  %v771_v35 = vmul.f32 0.5, %v770_v32 }
 0x27a   : > { %1427 = vtanh.f32 %v771_v35 }
 0x282   : > { %v1426_v33 = vpop.eup %1425 }
 0x283   : > { %782 = vrot.lane.b32.xlu0 %v1426_v33, %s1748_s17 }
 0x284   : > { %v1428_v36 = vpop.eup %1427 }
 0x285   : > { %v773_v37 = vmul.f32 0.5, %v1428_v36 }
 0x287   : > { %777 = vrot.lane.b32.xlu0 %v523_v34, %s1749_s23  ;;  %v774_v38 = vadd.f32 0.5, %v773_v37 }
 0x2f5   : > { %v783_v39 = vpop.permute.xlu0 %782 }
 0x2f6   : > { %v785_v40 = vmul.f32 %v783_v39, %v774_v38 }
 0x2f8   : > { %787 = vrot.lane.b32.xlu1 %v785_v40, %s1749_s23 }
 0x2f9   : > { %v778_v41 = vpop.permute.xlu0 %777 }
 0x2fa   : > { %v780_v42 = vmul.f32 %v778_v41, %v774_v38 }
 0x36a   : > { %v788_v43 = vpop.permute.xlu1 %787 }
 0x36b   : > { %v790_v44 = vadd.f32 %v788_v43, %v780_v42 }
 0x36d   : > { %1429 = vtanh.f32 %v790_v44 }
 0x377   : > { %v1430_v51 = vpop.eup %1429 }
 0x378   : > { %793 = vrot.lane.b32.xlu1 %v1430_v51, %s1748_s17 }
 0x3ea   : > { %v794_v55 = vpop.permute.xlu1 %793 }
 0x3eb   : > { %v796_v56 = vmul.f32 %v794_v55, %v774_v38 }
 0x3ed   : > { %798 = vrot.lane.b32.xlu0 %v796_v56, %s1749_s23 }
 0x3f1   : > { %803 = vrot.lane.b32.xlu0 %v790_v44, %s1750_s14 }
 0x45f   : > { %v799_v57 = vpop.permute.xlu0 %798 }
 0x460   : > { %801 = vst.msk [vmem:[#allocation2] sm:$0xff] %vm616_vm3, %v799_v57  ;;  %1263 = vmatmul.mubr.msk.f32.vlgmr.msra.gmra.mrb[2].mxu1 %vm616_vm3, %v799_v57  ;;  %987 = vst.msk [vmem:[#allocation16] sm:$0xff] (!%p1193_p7), %vm616_vm3, %v799_v57 }
 0x463   : > { %v804_v58 = vpop.permute.xlu0 %803 }
 0x464   : > { %806 = vst.msk [vmem:[#allocation3] sm:$0xff] %vm616_vm3, %v804_v58  ;;  %988 = vst.msk [vmem:[#allocation18] sm:$0xff] (!%p1193_p7), %vm616_vm3, %v804_v58 }
 0x533   : > { %v886_v63 = vpop.f32.mrb[2].mxu1 }
 0x534   : > { %v887_v0 = vadd.f32 %v1189_v62, %v886_v63  ;;  %v1264_v1 = vpop.f32.mrb[3].mxu1 }
 0x536   : > { %v890_v2 = vmax.f32 %v887_v0, 0.0 }
 0x538   : > { %1274 = vmatmul.mubr.msk.f32.vlgmr.msra.gmra.mrb[4].mxu0 %vm616_vm3, %v890_v2 }
 0x60b   : > { %v971_v4 = vpop.f32.mrb[4].mxu0 }
 0x60c   : > { %v972_v5 = vadd.f32 %v1191_v3, %v971_v4  ;;  %v1275_v6 = vpop.f32.mrb[5].mxu0 }
 0x60e   : > { %v975_v7 = vmul.f32 %v972_v5, %v972_v5 }
 0x610   : > { %v976_v8 = vsel %vm533_vm2, %v975_v7, 0.0 }
 0x611   : > { %977 = vadd.xlane.f32.xlu1 %v976_v8 }
 0x69e   : > { %v978_v9 = vpop.xlane.xlu1 %977 }
 0x69f   : > { %v979_v10 = vmax.f32 %v978_v9, 1e-24 }
 0x6a1   : > { %1431 = vrsqrt.f32 %v979_v10 }
 0x6a8   : > { %986 = sbr.rel (%p1193_p7) target bundleno = 1711 (0x6af), region = 96 }
 0x6ab   : > { %v1432_v11 = vpop.eup %1431 }
 0x6ac   : > { %v981_v12 = vmul.f32 %v1432_v11, %v972_v5 }
 0x6ae   : > { %982 = vst.msk [vmem:[%s503_s22] sm:$0xff] %vm533_vm2, %v981_v12 }
 0x6af PF: > { %s1751_s19 = smov [#allocation16]   ;;  %s1195_s17 = sshll.u32 %s1845_s29, 7 }
 0x6b0   : > { %s1014_s28 = sshll.u32 %s1751_s19, 4  ;;  %s2126_s21 = scalar_lea.hbm %s2226_s11, %s1195_s17  ;;  %s1015_s28 = int_to_ptr.vmem [resolvable:$true] %s1014_s28 }
 0x6b1   : > { %s1601_s15 = scalar_lea.vmem %s1015_s28, 128  ;;  %p2268_p12 = scmp.eq.s32.totalorder %s1845_s29, 3 }
 0x6b2   : > { %p1602_p8 = scmp.ne.s32.totalorder %s1015_s28, %s1601_s15  ;;  %p1608_p1 = scmp.lt.s32.totalorder %s1015_s28, %s1015_s28 }
 0x6b3   : > { %p1609_p6 = scmp.lt.s32.totalorder %s1601_s15, %s1601_s15 }
 0x6b4   : > { %p1603_p2 = pnand %p1602_p8, %p2268_p12 }
 0x6b5   : > { %p1610_p5 = por %p1609_p6, %p1608_p1 }
 0x6b6   : > { %p1604_p0 = pneg %p1603_p2 }
 0x6b8   : > { %p1611_p9 = pnand %p1610_p5, %p1604_p0 }
 0x6ba   : > { %1614 = shalt.err (!%p1611_p9)
}
 0x6bb   : > { %s1615_s30 = scalar_lea.hbm %s2227_s12, 128  ;;  %p2269_p10 = pmov %p2268_p12 }
 0x6bc   : > { %p1616_p13 = scmp.ne.s32.totalorder %s2227_s12, %s1615_s30  ;;  %p1621_p4 = scmp.lt.u32.totalorder %s1615_s30, %s2227_s12 }
 0x6be   : > { %p1617_p11 = pnand %p1616_p13, %p2269_p10 }
 0x6c0   : > { %p1618_p3 = pneg %p1617_p11 }
 0x6c2   : > { %p1623_p7 = pnand %p1621_p4, %p1618_p3 }
 0x6c4   : > { %1626 = shalt.err (!%p1623_p7)
}
 0x6c5   : > { %p2270_p8 = pmov %p2269_p10  ;;  %s1003_s2 = sshll.u32 %s503_s22, 4  ;;  %s2148_s2 = int_to_ptr.vmem [resolvable:$true] %s1003_s2 }
 0x6c6   : > { %s1752_s15 = smov [#allocation18]   ;;  %s990_s14 = scalar_lea.sflag [#allocation6], %s501_s25 }
 0x6c7   : > { %1329 = dma.vmem_to_hbm [thread:$0]  (%p2270_p8), %s1015_s28, 128, %s2227_s12, [#allocation17]  }
 0x6c8   : > { %s2150_s27 = sshll.u32 %s1752_s15, 4  ;;  %s1627_s30 = scalar_lea.vmem %s2148_s2, 128  ;;  %s1026_s27 = int_to_ptr.vmem [resolvable:$true] %s2150_s27 }
 0x6c9   : > { %p1628_p12 = scmp.ne.s32.totalorder %s2148_s2, %s1627_s30  ;;  %p2271_p2 = scmp.ne.s32.totalorder %s2249_s18, 0 }
 0x6ca   : > { %s1753_s16 = smov [#allocation15]  }
 0x6cb   : > { %p1629_p0 = pnand %p1628_p12, %p2271_p2  ;;  %s1631_s13 = sshll.u32 %s1753_s16, 4  ;;  %s1632_s13 = int_to_ptr.vmem [resolvable:$false] %s1631_s13 }
 0x6cc   : > { %s1633_s20 = scalar_lea.vmem %s1632_s13, 256  ;;  %p1634_p6 = scmp.lt.s32.totalorder %s2148_s2, %s1632_s13 }
 0x6cd   : > { %p1630_p1 = pneg %p1629_p0  ;;  %p1635_p5 = scmp.lt.s32.totalorder %s1633_s20, %s1627_s30 }
 0x6cf   : > { %p1636_p9 = por %p1635_p5, %p1634_p6 }
 0x6d1   : > { %p1637_p13 = pnand %p1636_p9, %p1630_p1 }
 0x6d3   : > { %1640 = shalt.err (!%p1637_p13)
}
 0x6d4   : > { %s1641_s25 = scalar_lea.hbm %s2126_s21, 128  ;;  %s1645_s24 = scalar_lea.hbm %s2226_s11, 512 }
 0x6d5   : > { %p1642_p10 = scmp.ne.s32.totalorder %s2126_s21, %s1641_s25  ;;  %p1646_p4 = scmp.lt.u32.totalorder %s2126_s21, %s2226_s11 }
 0x6d6   : > { %p1647_p7 = scmp.lt.u32.totalorder %s1645_s24, %s1641_s25  ;;  %p1649_p12 = scmp.lt.u32.totalorder %s1641_s25, %s2126_s21 }
 0x6d7   : > { %p1643_p11 = pnand %p1642_p10, %p2271_p2 }
 0x6d8   : > { %p1648_p8 = por %p1647_p7, %p1646_p4 }
 0x6d9   : > { %p1644_p3 = pneg %p1643_p11 }
 0x6da   : > { %p1650_p0 = por %p1649_p12, %p1648_p8 }
 0x6dc   : > { %p1651_p1 = pnand %p1650_p0, %p1644_p3 }
 0x6de   : > { %1654 = shalt.err (!%p1651_p1)
}
 0x6df   : > { %1327 = dma.vmem_to_hbm [thread:$0]  (%p2271_p2), %s2148_s2, 128, %s2126_s21, %s990_s14  }
 0x6e0   : > { %s1655_s23 = scalar_lea.vmem %s1026_s27, 128  ;;  %p2272_p5 = scmp.eq.s32.totalorder %s1845_s29, 3 }
 0x6e1   : > { %p1656_p6 = scmp.ne.s32.totalorder %s1026_s27, %s1655_s23  ;;  %p1662_p10 = scmp.lt.s32.totalorder %s1026_s27, %s1026_s27 }
 0x6e2   : > { %p1663_p11 = scmp.lt.s32.totalorder %s1655_s23, %s1655_s23 }
 0x6e3   : > { %p1657_p9 = pnand %p1656_p6, %p2272_p5 }
 0x6e4   : > { %p1664_p4 = por %p1663_p11, %p1662_p10 }
 0x6e5   : > { %p1658_p13 = pneg %p1657_p9 }
 0x6e7   : > { %p1665_p7 = pnand %p1664_p4, %p1658_p13 }
 0x6e9   : > { %1668 = shalt.err (!%p1665_p7)
}
 0x6ea   : > { %s2273_s16 = sld [smem:[#allocation32_spill]]  ;;  %p2274_p3 = pmov %p2272_p5 }
 0x6f0   : > { %s1669_s18 = scalar_lea.hbm %s2273_s16, 128 }
 0x6f1   : > { %p1670_p2 = scmp.ne.s32.totalorder %s2273_s16, %s1669_s18  ;;  %p1675_p0 = scmp.lt.u32.totalorder %s1669_s18, %s2273_s16 }
 0x6f3   : > { %p1671_p8 = pnand %p1670_p2, %p2274_p3 }
 0x6f5   : > { %p1672_p12 = pneg %p1671_p8 }
 0x6f7   : > { %p1677_p1 = pnand %p1675_p0, %p1672_p12 }
 0x6f9   : > { %1680 = shalt.err (!%p1677_p1)
}
 0x6fa   : > { %p2275_p6 = pmov %p2274_p3  ;;  %p2276_p5 = pmov %p2274_p3 }
 0x6fc   : > { %1331 = dma.vmem_to_hbm [thread:$0]  (%p2275_p6), %s1026_s27, 128, %s2273_s16, [#allocation17]  }
 0x6fd   : > { %1714 = dma.done.wait (%p2276_p5), [#allocation17], 256   ;;  %p2277_p9 = pmov %p2274_p3 }
 0x6ff   : > { %1716 = vsyncadd (%p2277_p9), [#allocation17], 4294967040 }
 0x700 PF: > { %s2278_s22 = sld [smem:[#allocation27_spill]]  ;;  %s2279_s28 = sld [smem:[#allocation25_spill]] }
 0x701   : > { %s2280_s24 = sld [smem:[#allocation30_spill]] }
 0x706   : > { %p1376_p13 = scmp.ge.s32.totalorder %s2278_s22, 2  ;;  %s1045_s19 = sand.u32 1, %s2279_s28  }
 0x707   : > { %p2281_p10 = scmp.ne.s32.totalorder %s2280_s24, 0  ;;  %s1046_s17 = scalar_lea.sflag [#allocation6], %s1045_s19 }
 0x709   : > { %p1357_p11 = pnand %p1376_p13, %p2281_p10 }
 0x70b   : > { %1718 = dma.done.wait (!%p1357_p11), %s1046_s17, 128  }
 0x70c   : > { %1720 = vsyncadd (!%p1357_p11), %s1046_s17, 4294967168  ;;  %s2282_s28 = sld [smem:[#allocation28_spill]]  ;;  %s2283_s23 = sld [smem:[#allocation26_spill]] }
 0x70d   : > { %s2284_s27 = sld [smem:[#allocation29_spill]]  ;;  %s2285_s25 = smov %s1727_s26 }
 0x712   : > { %p29_p4 = scmp.ge.s32.totalorder %s2282_s28, 6   ;;  %s2286_s26 = smov %s2283_s23 }
 0x714   :  { %31 = sbr.rel (!%p29_p4) target bundleno = 11 (0xb), region = 148 }
 0x71b   :  { %1051 = vsyncpa [#allocation5], 1 }
 0x71c   :  { %1053 = vsyncpa [#allocation5 + $0x1], 1 }
 0x71d   :  { %1054 = vsyncpa [#allocation8], 1 }
 0x71e   :  { %1055 = vsyncpa [#allocation11], 1 }
 0x71f   :  { %1056 = vsyncpa [#allocation14], 1 }
 0x720   :  { %1057 = vsyncpa [#allocation6], 1 }
 0x721   :  { %1059 = vsyncpa [#allocation6 + $0x1], 1 }
 0x722   :  { %1060 = vsyncpa [#allocation17], 1 }

</bundles_post_ra>
